<compile_context>
chip_gen: v7x
topology: tpu7x:2x2x1
jax: 0.10.0
libtpu: 0.0.40
codegen_flags: <defaults>
</compile_context>

<pallas_src>
import math

import jax
import jax.numpy as jnp
from jax.experimental import pallas as pl
from jax.experimental.pallas import tpu as pltpu


def _round_up(n, m):
    return ((n + m - 1) // m) * m


def _make_self_attention_kernel(num_heads, head_dim, hidden_dim, compute_dtype):
    scale = 1.0 / math.sqrt(head_dim)

    def kernel(x_ref, wqkv_ref, bqkv_ref, wo_ref, bo_ref, o_ref):
        blk_b, S, Dp = x_ref.shape          # Dp = lane-padded input features
        Hp = o_ref.shape[-1]                # lane-padded fc_out width

        # ---- Fused Q/K/V projection: one (B*S, Dp) @ (Dp, 3*hidden) MXU pass ----
        x2 = x_ref[...].reshape(blk_b * S, Dp).astype(compute_dtype)
        wqkv = wqkv_ref[...].astype(compute_dtype)
        qkv = jnp.dot(x2, wqkv, preferred_element_type=jnp.float32) + bqkv_ref[...]
        qkv = qkv.reshape(blk_b, S, 3 * hidden_dim)      # (B, S, 3*hidden), fp32

        wo = wo_ref[...]                                 # (H, Dh, Hp)
        # fc_out accumulator, pre-seeded with the bias (saves one trailing add).
        acc = jnp.broadcast_to(bo_ref[...].astype(jnp.float32), (blk_b * S, Hp))

        # Per-head attention, batched over the batch dimension.  The head concat
        # is folded into fc_out via per-head accumulation (no jnp.concatenate).
        for h in range(num_heads):
            q_lo = h * head_dim
            k_lo = hidden_dim + h * head_dim
            v_lo = 2 * hidden_dim + h * head_dim
            # Scale on Q (B,S,Dh) rather than on energy (B,S,S): less VALU work.
            qh = qkv[:, :, q_lo:q_lo + head_dim] * scale  # (B, S, Dh)
            kh = qkv[:, :, k_lo:k_lo + head_dim]
            vh = qkv[:, :, v_lo:v_lo + head_dim]

            # energy = (q / sqrt(Dh)) @ k^T  -> (B, S, S)
            e = jnp.einsum(
                "bqd,bkd->bqk",
                qh.astype(compute_dtype), kh.astype(compute_dtype),
                preferred_element_type=jnp.float32)

            # Numerically stable softmax (fp32); divide goes to the EUP.
            m = jnp.max(e, axis=-1, keepdims=True)
            p = jnp.exp(e - m)
            denom = jnp.sum(p, axis=-1, keepdims=True)
            attn = p * pl.reciprocal(denom, approx=True)

            # ctx_h = attn @ v  -> (B, S, Dh)
            ctx = jnp.einsum(
                "bqk,bkd->bqd",
                attn.astype(compute_dtype), vh.astype(compute_dtype),
                preferred_element_type=jnp.float32)

            # Fold head concat into fc_out:  acc += ctx_h @ Wo[h*Dh:(h+1)*Dh, :]
            acc = acc + jnp.dot(
                ctx.reshape(blk_b * S, head_dim).astype(compute_dtype),
                wo[h].astype(compute_dtype),
                preferred_element_type=jnp.float32)

        o_ref[...] = acc.reshape(blk_b, S, Hp).astype(o_ref.dtype)

    return kernel


def self_attention(x, params, *, num_heads, block_b=None,
                   compute_dtype=jnp.float32):
    """x: (B, S, D_in) float32. params: weights (in, out) and biases (1, out).

    compute_dtype: set to jnp.bfloat16 on v5e/v6e to feed bf16 operands to the MXU
    (softmax / accumulation stay fp32).  block_b: batch rows per grid step
    (default: all of B -> single grid step; set block_b=1 on v7x to use both TCs).
    """
    B, S, D_in = x.shape
    hidden_dim = params["wq"].shape[1]
    head_dim = hidden_dim // num_heads

    LANES = 128
    Dp = _round_up(D_in, LANES)        # lane-dense input features
    Hp = _round_up(hidden_dim, LANES)  # lane-dense fc_out output

    # ---- wrapper-side weight / input plumbing (pure layout, no math change) ----
    x_p = jnp.pad(x, ((0, 0), (0, 0), (0, Dp - D_in)))

    wqkv = jnp.concatenate([params["wq"], params["wk"], params["wv"]], axis=1)
    wqkv = jnp.pad(wqkv, ((0, Dp - D_in), (0, 0)))               # (Dp, 3*hidden)
    bqkv = jnp.concatenate([params["bq"], params["bk"], params["bv"]], axis=1)

    wo = jnp.pad(params["wo"], ((0, 0), (0, Hp - hidden_dim)))   # (hidden, Hp)
    wo = wo.reshape(num_heads, head_dim, Hp)                     # head-major
    bo = jnp.pad(params["bo"], ((0, 0), (0, Hp - hidden_dim)))   # (1, Hp)

    if block_b is None:
        block_b = B
    assert B % block_b == 0, "block_b must divide B"
    grid = (pl.cdiv(B, block_b),)

    kernel = _make_self_attention_kernel(num_heads, head_dim, hidden_dim,
                                         compute_dtype)

    out_p = pl.pallas_call(
        kernel,
        out_shape=jax.ShapeDtypeStruct((B, S, Hp), x.dtype),
        grid=grid,
        in_specs=[
            pl.BlockSpec((block_b, S, Dp), lambda i: (i, 0, 0)),   # x tile
            pl.BlockSpec(wqkv.shape, lambda i: (0, 0)),            # weights stay
            pl.BlockSpec(bqkv.shape, lambda i: (0, 0)),            # VMEM-resident
            pl.BlockSpec(wo.shape, lambda i: (0, 0, 0)),
            pl.BlockSpec(bo.shape, lambda i: (0, 0)),
        ],
        out_specs=pl.BlockSpec((block_b, S, Hp), lambda i: (i, 0, 0)),
        compiler_params=pltpu.CompilerParams(
            dimension_semantics=("parallel",)),
    )(x_p, wqkv, bqkv, wo, bo)

    # Drop the lane padding on the output.
    return out_p[..., :hidden_dim]
    # TODO(synk): for large S, switch the per-head S x S softmax to a flash-style
    # K/V-tiled online softmax sized for v7x's 64 MiB VMEM.


def _reference(x, params, *, num_heads):
    """Pure-JAX reference mirroring the PyTorch forward exactly."""
    B, S, _ = x.shape
    hidden_dim = params["wq"].shape[1]
    head_dim = hidden_dim // num_heads

    def lin(v, w, b):
        return v @ w + b  # b broadcasts from (1, out)

    q = lin(x, params["wq"], params["bq"]).reshape(B, S, num_heads, head_dim).transpose(0, 2, 1, 3)
    k = lin(x, params["wk"], params["bk"]).reshape(B, S, num_heads, head_dim).transpose(0, 2, 1, 3)
    v = lin(x, params["wv"], params["bv"]).reshape(B, S, num_heads, head_dim).transpose(0, 2, 1, 3)

    energy = jnp.einsum("bhqd,bhkd->bhqk", q, k) / math.sqrt(head_dim)
    attn = jax.nn.softmax(energy, axis=-1)
    out = jnp.einsum("bhqk,bhkd->bhqd", attn, v)
    out = out.transpose(0, 2, 1, 3).reshape(B, S, hidden_dim)
    return lin(out, params["wo"], params["bo"])


if __name__ == "__main__":
    # Small shapes consistent with the module's forward.
    batch, seq_len = 2, 8
    input_dim, hidden_dim, num_heads = 32, 32, 4

    key = jax.random.PRNGKey(0)
    keys = jax.random.split(key, 9)

    # Deterministic synthetic parameters (shapes from nn.Linear in __init__).
    params = {
        "wq": 0.05 * jax.random.normal(keys[0], (input_dim, hidden_dim), jnp.float32),
        "bq": 0.05 * jax.random.normal(keys[1], (1, hidden_dim), jnp.float32),
        "wk": 0.05 * jax.random.normal(keys[2], (input_dim, hidden_dim), jnp.float32),
        "bk": 0.05 * jax.random.normal(keys[3], (1, hidden_dim), jnp.float32),
        "wv": 0.05 * jax.random.normal(keys[4], (input_dim, hidden_dim), jnp.float32),
        "bv": 0.05 * jax.random.normal(keys[5], (1, hidden_dim), jnp.float32),
        "wo": 0.05 * jax.random.normal(keys[6], (hidden_dim, hidden_dim), jnp.float32),
        "bo": 0.05 * jax.random.normal(keys[7], (1, hidden_dim), jnp.float32),
    }

    x = jax.random.normal(keys[8], (batch, seq_len, input_dim), jnp.float32)

    out = self_attention(x, params, num_heads=num_heads)
    out = jax.block_until_ready(out)

    ref = _reference(x, params, num_heads=num_heads)
    assert out.shape == (batch, seq_len, hidden_dim)
    # Tolerance loosened slightly vs. exact fp32 because the softmax denominator
    # uses the EUP approximate reciprocal.
    assert jnp.allclose(out, ref, atol=2e-3, rtol=2e-3), "mismatch vs reference"

    print("KERNEL_OK")
</pallas_src>

<mosaic_0001>
module attributes {stable_mosaic.version = 11 : i64} {
  func.func @kernel(%arg0: i32, %arg1: memref<2x8x128xf32, #tpu.memory_space<vmem>>, %arg2: memref<128x96xf32, #tpu.memory_space<vmem>>, %arg3: memref<1x96xf32, #tpu.memory_space<vmem>>, %arg4: memref<4x8x128xf32, #tpu.memory_space<vmem>>, %arg5: memref<1x128xf32, #tpu.memory_space<vmem>>, %arg6: memref<2x8x128xf32, #tpu.memory_space<vmem>>) attributes {dimension_semantics = [#tpu.dimension_semantics<parallel>], iteration_bounds = array<i64: 1>, scalar_prefetch = 0 : i64, scratch_operands = 0 : i64, tpu.core_type = #tpu.core_type<tc>, window_params = [{transform_indices = @transform_0, window_bounds = array<i64: 2, 8, 128>}, {pipeline_mode = #tpu.pipeline_mode<synchronous>, transform_indices = @transform_1, window_bounds = array<i64: 128, 96>}, {pipeline_mode = #tpu.pipeline_mode<synchronous>, transform_indices = @transform_2, window_bounds = array<i64: 1, 96>}, {pipeline_mode = #tpu.pipeline_mode<synchronous>, transform_indices = @transform_3, window_bounds = array<i64: 4, 8, 128>}, {pipeline_mode = #tpu.pipeline_mode<synchronous>, transform_indices = @transform_4, window_bounds = array<i64: 1, 128>}, {transform_indices = @transform_5, window_bounds = array<i64: 2, 8, 128>}]} {
    %c0 = arith.constant 0 : index
    %c0_0 = arith.constant 0 : index
    %c0_1 = arith.constant 0 : index
    %0 = vector.load %arg1[%c0, %c0_0, %c0_1] : memref<2x8x128xf32, #tpu.memory_space<vmem>>, vector<2x8x128xf32>
    %1 = vector.shape_cast %0 : vector<2x8x128xf32> to vector<16x128xf32>
    %c0_2 = arith.constant 0 : index
    %c0_3 = arith.constant 0 : index
    %2 = vector.load %arg2[%c0_2, %c0_3] : memref<128x96xf32, #tpu.memory_space<vmem>>, vector<128x96xf32>
    %cst = arith.constant dense<0.000000e+00> : vector<16x96xf32>
    %3 = tpu.matmul %1, %2, %cst {dimension_numbers = #tpu.dot_dimension_numbers<[1], [0], [0], [1], [0, 0, 1, 1], [], []>} : vector<16x128xf32>, vector<128x96xf32>, vector<16x96xf32> -> vector<16x96xf32>
    %c0_4 = arith.constant 0 : index
    %c0_5 = arith.constant 0 : index
    %4 = vector.load %arg3[%c0_4, %c0_5] : memref<1x96xf32, #tpu.memory_space<vmem>>, vector<1x96xf32>
    %5 = vector.broadcast %4 : vector<1x96xf32> to vector<16x96xf32>
    %6 = arith.addf %3, %5 : vector<16x96xf32>
    %7 = vector.shape_cast %6 : vector<16x96xf32> to vector<2x8x96xf32>
    %c0_6 = arith.constant 0 : index
    %c0_7 = arith.constant 0 : index
    %c0_8 = arith.constant 0 : index
    %8 = vector.load %arg4[%c0_6, %c0_7, %c0_8] : memref<4x8x128xf32, #tpu.memory_space<vmem>>, vector<4x8x128xf32>
    %c0_9 = arith.constant 0 : index
    %c0_10 = arith.constant 0 : index
    %9 = vector.load %arg5[%c0_9, %c0_10] : memref<1x128xf32, #tpu.memory_space<vmem>>, vector<1x128xf32>
    %10 = vector.shape_cast %9 : vector<1x128xf32> to vector<1x128xf32>
    %11 = vector.broadcast %10 : vector<1x128xf32> to vector<16x128xf32>
    %12 = vector.extract_strided_slice %7 {offsets = [0, 0, 0], sizes = [2, 8, 8], strides = [1, 1, 1]} : vector<2x8x96xf32> to vector<2x8x8xf32>
    %cst_11 = arith.constant 0.353553385 : f32
    %13 = vector.broadcast %cst_11 : f32 to vector<2x8x8xf32>
    %14 = arith.mulf %12, %13 : vector<2x8x8xf32>
    %15 = vector.extract_strided_slice %7 {offsets = [0, 0, 32], sizes = [2, 8, 8], strides = [1, 1, 1]} : vector<2x8x96xf32> to vector<2x8x8xf32>
    %16 = vector.extract_strided_slice %7 {offsets = [0, 0, 64], sizes = [2, 8, 8], strides = [1, 1, 1]} : vector<2x8x96xf32> to vector<2x8x8xf32>
    "tpu.trace_start"() <{level = 10 : i32, message = "bqd,bkd->bqk"}> : () -> ()
    %cst_12 = arith.constant dense<0.000000e+00> : vector<2x8x8xf32>
    %17 = tpu.matmul %14, %15, %cst_12 {dimension_numbers = #tpu.dot_dimension_numbers<[2], [2], [1], [1], [0, 0, 0, 1, 1, 1], [0], [0]>} : vector<2x8x8xf32>, vector<2x8x8xf32>, vector<2x8x8xf32> -> vector<2x8x8xf32>
    "tpu.trace_stop"() : () -> ()
    %cst_13 = arith.constant dense<0xFF800000> : vector<2x8xf32>
    %18 = vector.multi_reduction <maximumf>, %17, %cst_13 [2] : vector<2x8x8xf32> to vector<2x8xf32>
    %19 = vector.shape_cast %18 : vector<2x8xf32> to vector<2x8x1xf32>
    %20 = vector.broadcast %19 : vector<2x8x1xf32> to vector<2x8x8xf32>
    %21 = arith.subf %17, %20 : vector<2x8x8xf32>
    %22 = math.exp %21 : vector<2x8x8xf32>
    %cst_14 = arith.constant dense<0.000000e+00> : vector<2x8xf32>
    %23 = vector.multi_reduction <add>, %22, %cst_14 [2] : vector<2x8x8xf32> to vector<2x8xf32>
    %24 = vector.shape_cast %23 : vector<2x8xf32> to vector<2x8x1xf32>
    %25 = tpu.reciprocal %24 {approx = true} : vector<2x8x1xf32> -> vector<2x8x1xf32>
    %26 = vector.broadcast %25 : vector<2x8x1xf32> to vector<2x8x8xf32>
    %27 = arith.mulf %22, %26 : vector<2x8x8xf32>
    "tpu.trace_start"() <{level = 10 : i32, message = "bqk,bkd->bqd"}> : () -> ()
    %cst_15 = arith.constant dense<0.000000e+00> : vector<2x8x8xf32>
    %28 = tpu.matmul %27, %16, %cst_15 {dimension_numbers = #tpu.dot_dimension_numbers<[2], [1], [1], [2], [0, 0, 0, 1, 1, 2], [0], [0]>} : vector<2x8x8xf32>, vector<2x8x8xf32>, vector<2x8x8xf32> -> vector<2x8x8xf32>
    "tpu.trace_stop"() : () -> ()
    %29 = vector.shape_cast %28 : vector<2x8x8xf32> to vector<16x8xf32>
    %30 = vector.extract_strided_slice %8 {offsets = [0, 0, 0], sizes = [1, 8, 128], strides = [1, 1, 1]} : vector<4x8x128xf32> to vector<1x8x128xf32>
    %31 = vector.shape_cast %30 : vector<1x8x128xf32> to vector<8x128xf32>
    %cst_16 = arith.constant dense<0.000000e+00> : vector<16x128xf32>
    %32 = tpu.matmul %29, %31, %cst_16 {dimension_numbers = #tpu.dot_dimension_numbers<[1], [0], [0], [1], [0, 0, 1, 1], [], []>} : vector<16x8xf32>, vector<8x128xf32>, vector<16x128xf32> -> vector<16x128xf32>
    %33 = arith.addf %11, %32 : vector<16x128xf32>
    %34 = vector.extract_strided_slice %7 {offsets = [0, 0, 8], sizes = [2, 8, 8], strides = [1, 1, 1]} : vector<2x8x96xf32> to vector<2x8x8xf32>
    %cst_17 = arith.constant 0.353553385 : f32
    %35 = vector.broadcast %cst_17 : f32 to vector<2x8x8xf32>
    %36 = arith.mulf %34, %35 : vector<2x8x8xf32>
    %37 = vector.extract_strided_slice %7 {offsets = [0, 0, 40], sizes = [2, 8, 8], strides = [1, 1, 1]} : vector<2x8x96xf32> to vector<2x8x8xf32>
    %38 = vector.extract_strided_slice %7 {offsets = [0, 0, 72], sizes = [2, 8, 8], strides = [1, 1, 1]} : vector<2x8x96xf32> to vector<2x8x8xf32>
    "tpu.trace_start"() <{level = 10 : i32, message = "bqd,bkd->bqk"}> : () -> ()
    %cst_18 = arith.constant dense<0.000000e+00> : vector<2x8x8xf32>
    %39 = tpu.matmul %36, %37, %cst_18 {dimension_numbers = #tpu.dot_dimension_numbers<[2], [2], [1], [1], [0, 0, 0, 1, 1, 1], [0], [0]>} : vector<2x8x8xf32>, vector<2x8x8xf32>, vector<2x8x8xf32> -> vector<2x8x8xf32>
    "tpu.trace_stop"() : () -> ()
    %cst_19 = arith.constant dense<0xFF800000> : vector<2x8xf32>
    %40 = vector.multi_reduction <maximumf>, %39, %cst_19 [2] : vector<2x8x8xf32> to vector<2x8xf32>
    %41 = vector.shape_cast %40 : vector<2x8xf32> to vector<2x8x1xf32>
    %42 = vector.broadcast %41 : vector<2x8x1xf32> to vector<2x8x8xf32>
    %43 = arith.subf %39, %42 : vector<2x8x8xf32>
    %44 = math.exp %43 : vector<2x8x8xf32>
    %cst_20 = arith.constant dense<0.000000e+00> : vector<2x8xf32>
    %45 = vector.multi_reduction <add>, %44, %cst_20 [2] : vector<2x8x8xf32> to vector<2x8xf32>
    %46 = vector.shape_cast %45 : vector<2x8xf32> to vector<2x8x1xf32>
    %47 = tpu.reciprocal %46 {approx = true} : vector<2x8x1xf32> -> vector<2x8x1xf32>
    %48 = vector.broadcast %47 : vector<2x8x1xf32> to vector<2x8x8xf32>
    %49 = arith.mulf %44, %48 : vector<2x8x8xf32>
    "tpu.trace_start"() <{level = 10 : i32, message = "bqk,bkd->bqd"}> : () -> ()
    %cst_21 = arith.constant dense<0.000000e+00> : vector<2x8x8xf32>
    %50 = tpu.matmul %49, %38, %cst_21 {dimension_numbers = #tpu.dot_dimension_numbers<[2], [1], [1], [2], [0, 0, 0, 1, 1, 2], [0], [0]>} : vector<2x8x8xf32>, vector<2x8x8xf32>, vector<2x8x8xf32> -> vector<2x8x8xf32>
    "tpu.trace_stop"() : () -> ()
    %51 = vector.shape_cast %50 : vector<2x8x8xf32> to vector<16x8xf32>
    %52 = vector.extract_strided_slice %8 {offsets = [1, 0, 0], sizes = [1, 8, 128], strides = [1, 1, 1]} : vector<4x8x128xf32> to vector<1x8x128xf32>
    %53 = vector.shape_cast %52 : vector<1x8x128xf32> to vector<8x128xf32>
    %cst_22 = arith.constant dense<0.000000e+00> : vector<16x128xf32>
    %54 = tpu.matmul %51, %53, %cst_22 {dimension_numbers = #tpu.dot_dimension_numbers<[1], [0], [0], [1], [0, 0, 1, 1], [], []>} : vector<16x8xf32>, vector<8x128xf32>, vector<16x128xf32> -> vector<16x128xf32>
    %55 = arith.addf %33, %54 : vector<16x128xf32>
    %56 = vector.extract_strided_slice %7 {offsets = [0, 0, 16], sizes = [2, 8, 8], strides = [1, 1, 1]} : vector<2x8x96xf32> to vector<2x8x8xf32>
    %cst_23 = arith.constant 0.353553385 : f32
    %57 = vector.broadcast %cst_23 : f32 to vector<2x8x8xf32>
    %58 = arith.mulf %56, %57 : vector<2x8x8xf32>
    %59 = vector.extract_strided_slice %7 {offsets = [0, 0, 48], sizes = [2, 8, 8], strides = [1, 1, 1]} : vector<2x8x96xf32> to vector<2x8x8xf32>
    %60 = vector.extract_strided_slice %7 {offsets = [0, 0, 80], sizes = [2, 8, 8], strides = [1, 1, 1]} : vector<2x8x96xf32> to vector<2x8x8xf32>
    "tpu.trace_start"() <{level = 10 : i32, message = "bqd,bkd->bqk"}> : () -> ()
    %cst_24 = arith.constant dense<0.000000e+00> : vector<2x8x8xf32>
    %61 = tpu.matmul %58, %59, %cst_24 {dimension_numbers = #tpu.dot_dimension_numbers<[2], [2], [1], [1], [0, 0, 0, 1, 1, 1], [0], [0]>} : vector<2x8x8xf32>, vector<2x8x8xf32>, vector<2x8x8xf32> -> vector<2x8x8xf32>
    "tpu.trace_stop"() : () -> ()
    %cst_25 = arith.constant dense<0xFF800000> : vector<2x8xf32>
    %62 = vector.multi_reduction <maximumf>, %61, %cst_25 [2] : vector<2x8x8xf32> to vector<2x8xf32>
    %63 = vector.shape_cast %62 : vector<2x8xf32> to vector<2x8x1xf32>
    %64 = vector.broadcast %63 : vector<2x8x1xf32> to vector<2x8x8xf32>
    %65 = arith.subf %61, %64 : vector<2x8x8xf32>
    %66 = math.exp %65 : vector<2x8x8xf32>
    %cst_26 = arith.constant dense<0.000000e+00> : vector<2x8xf32>
    %67 = vector.multi_reduction <add>, %66, %cst_26 [2] : vector<2x8x8xf32> to vector<2x8xf32>
    %68 = vector.shape_cast %67 : vector<2x8xf32> to vector<2x8x1xf32>
    %69 = tpu.reciprocal %68 {approx = true} : vector<2x8x1xf32> -> vector<2x8x1xf32>
    %70 = vector.broadcast %69 : vector<2x8x1xf32> to vector<2x8x8xf32>
    %71 = arith.mulf %66, %70 : vector<2x8x8xf32>
    "tpu.trace_start"() <{level = 10 : i32, message = "bqk,bkd->bqd"}> : () -> ()
    %cst_27 = arith.constant dense<0.000000e+00> : vector<2x8x8xf32>
    %72 = tpu.matmul %71, %60, %cst_27 {dimension_numbers = #tpu.dot_dimension_numbers<[2], [1], [1], [2], [0, 0, 0, 1, 1, 2], [0], [0]>} : vector<2x8x8xf32>, vector<2x8x8xf32>, vector<2x8x8xf32> -> vector<2x8x8xf32>
    "tpu.trace_stop"() : () -> ()
    %73 = vector.shape_cast %72 : vector<2x8x8xf32> to vector<16x8xf32>
    %74 = vector.extract_strided_slice %8 {offsets = [2, 0, 0], sizes = [1, 8, 128], strides = [1, 1, 1]} : vector<4x8x128xf32> to vector<1x8x128xf32>
    %75 = vector.shape_cast %74 : vector<1x8x128xf32> to vector<8x128xf32>
    %cst_28 = arith.constant dense<0.000000e+00> : vector<16x128xf32>
    %76 = tpu.matmul %73, %75, %cst_28 {dimension_numbers = #tpu.dot_dimension_numbers<[1], [0], [0], [1], [0, 0, 1, 1], [], []>} : vector<16x8xf32>, vector<8x128xf32>, vector<16x128xf32> -> vector<16x128xf32>
    %77 = arith.addf %55, %76 : vector<16x128xf32>
    %78 = vector.extract_strided_slice %7 {offsets = [0, 0, 24], sizes = [2, 8, 8], strides = [1, 1, 1]} : vector<2x8x96xf32> to vector<2x8x8xf32>
    %cst_29 = arith.constant 0.353553385 : f32
    %79 = vector.broadcast %cst_29 : f32 to vector<2x8x8xf32>
    %80 = arith.mulf %78, %79 : vector<2x8x8xf32>
    %81 = vector.extract_strided_slice %7 {offsets = [0, 0, 56], sizes = [2, 8, 8], strides = [1, 1, 1]} : vector<2x8x96xf32> to vector<2x8x8xf32>
    %82 = vector.extract_strided_slice %7 {offsets = [0, 0, 88], sizes = [2, 8, 8], strides = [1, 1, 1]} : vector<2x8x96xf32> to vector<2x8x8xf32>
    "tpu.trace_start"() <{level = 10 : i32, message = "bqd,bkd->bqk"}> : () -> ()
    %cst_30 = arith.constant dense<0.000000e+00> : vector<2x8x8xf32>
    %83 = tpu.matmul %80, %81, %cst_30 {dimension_numbers = #tpu.dot_dimension_numbers<[2], [2], [1], [1], [0, 0, 0, 1, 1, 1], [0], [0]>} : vector<2x8x8xf32>, vector<2x8x8xf32>, vector<2x8x8xf32> -> vector<2x8x8xf32>
    "tpu.trace_stop"() : () -> ()
    %cst_31 = arith.constant dense<0xFF800000> : vector<2x8xf32>
    %84 = vector.multi_reduction <maximumf>, %83, %cst_31 [2] : vector<2x8x8xf32> to vector<2x8xf32>
    %85 = vector.shape_cast %84 : vector<2x8xf32> to vector<2x8x1xf32>
    %86 = vector.broadcast %85 : vector<2x8x1xf32> to vector<2x8x8xf32>
    %87 = arith.subf %83, %86 : vector<2x8x8xf32>
    %88 = math.exp %87 : vector<2x8x8xf32>
    %cst_32 = arith.constant dense<0.000000e+00> : vector<2x8xf32>
    %89 = vector.multi_reduction <add>, %88, %cst_32 [2] : vector<2x8x8xf32> to vector<2x8xf32>
    %90 = vector.shape_cast %89 : vector<2x8xf32> to vector<2x8x1xf32>
    %91 = tpu.reciprocal %90 {approx = true} : vector<2x8x1xf32> -> vector<2x8x1xf32>
    %92 = vector.broadcast %91 : vector<2x8x1xf32> to vector<2x8x8xf32>
    %93 = arith.mulf %88, %92 : vector<2x8x8xf32>
    "tpu.trace_start"() <{level = 10 : i32, message = "bqk,bkd->bqd"}> : () -> ()
    %cst_33 = arith.constant dense<0.000000e+00> : vector<2x8x8xf32>
    %94 = tpu.matmul %93, %82, %cst_33 {dimension_numbers = #tpu.dot_dimension_numbers<[2], [1], [1], [2], [0, 0, 0, 1, 1, 2], [0], [0]>} : vector<2x8x8xf32>, vector<2x8x8xf32>, vector<2x8x8xf32> -> vector<2x8x8xf32>
    "tpu.trace_stop"() : () -> ()
    %95 = vector.shape_cast %94 : vector<2x8x8xf32> to vector<16x8xf32>
    %96 = vector.extract_strided_slice %8 {offsets = [3, 0, 0], sizes = [1, 8, 128], strides = [1, 1, 1]} : vector<4x8x128xf32> to vector<1x8x128xf32>
    %97 = vector.shape_cast %96 : vector<1x8x128xf32> to vector<8x128xf32>
    %cst_34 = arith.constant dense<0.000000e+00> : vector<16x128xf32>
    %98 = tpu.matmul %95, %97, %cst_34 {dimension_numbers = #tpu.dot_dimension_numbers<[1], [0], [0], [1], [0, 0, 1, 1], [], []>} : vector<16x8xf32>, vector<8x128xf32>, vector<16x128xf32> -> vector<16x128xf32>
    %99 = arith.addf %77, %98 : vector<16x128xf32>
    %100 = vector.shape_cast %99 : vector<16x128xf32> to vector<2x8x128xf32>
    %c0_35 = arith.constant 0 : index
    %c0_36 = arith.constant 0 : index
    %c0_37 = arith.constant 0 : index
    %101 = vector.load %arg6[%c0_35, %c0_36, %c0_37] : memref<2x8x128xf32, #tpu.memory_space<vmem>>, vector<2x8x128xf32>
    tpu.vector_store %arg6[%c0_35, %c0_36, %c0_37], %100 {strides = array<i32>} : memref<2x8x128xf32, #tpu.memory_space<vmem>>, vector<2x8x128xf32>,
    return
  }
  func.func @transform_0(%arg0: i32) -> (i32, i32, i32) {
    %c0_i32 = arith.constant 0 : i32
    %c0_i32_0 = arith.constant 0 : i32
    %c0_i32_1 = arith.constant 0 : i32
    return %arg0, %c0_i32, %c0_i32_0 : i32, i32, i32
  }
  func.func @transform_1(%arg0: i32) -> (i32, i32) {
    %c0_i32 = arith.constant 0 : i32
    %c0_i32_0 = arith.constant 0 : i32
    %c0_i32_1 = arith.constant 0 : i32
    return %c0_i32, %c0_i32_0 : i32, i32
  }
  func.func @transform_2(%arg0: i32) -> (i32, i32) {
    %c0_i32 = arith.constant 0 : i32
    %c0_i32_0 = arith.constant 0 : i32
    %c0_i32_1 = arith.constant 0 : i32
    return %c0_i32, %c0_i32_0 : i32, i32
  }
  func.func @transform_3(%arg0: i32) -> (i32, i32, i32) {
    %c0_i32 = arith.constant 0 : i32
    %c0_i32_0 = arith.constant 0 : i32
    %c0_i32_1 = arith.constant 0 : i32
    %c0_i32_2 = arith.constant 0 : i32
    return %c0_i32, %c0_i32_0, %c0_i32_1 : i32, i32, i32
  }
  func.func @transform_4(%arg0: i32) -> (i32, i32) {
    %c0_i32 = arith.constant 0 : i32
    %c0_i32_0 = arith.constant 0 : i32
    %c0_i32_1 = arith.constant 0 : i32
    return %c0_i32, %c0_i32_0 : i32, i32
  }
  func.func @transform_5(%arg0: i32) -> (i32, i32, i32) {
    %c0_i32 = arith.constant 0 : i32
    %c0_i32_0 = arith.constant 0 : i32
    %c0_i32_1 = arith.constant 0 : i32
    return %arg0, %c0_i32, %c0_i32_0 : i32, i32, i32
  }
}

</mosaic_0001>

<bundles_post_ra>
// kernel: tpu_custom_call.1
= control target key start
LH: loop header
LB: loop body
LE: loop exit
PB: predicated region body
PF: predicated region fallthrough
CT: control target
= control target key end

     0   :  { %s2414_s0 = inlined_call_operand.vmem [shape: f32[2,8,128], index: 0, kind: input, shape index: {}]   ;;  %s2415_s1 = inlined_call_operand.vmem [shape: f32[128,96], index: 1, kind: input, shape index: {}]   ;;  %s2416_s2 = inlined_call_operand.vmem [shape: f32[1,96], index: 2, kind: input, shape index: {}]   ;;  %s2417_s3 = inlined_call_operand.vmem [shape: f32[4,8,128], index: 3, kind: input, shape index: {}]   ;;  %s2418_s4 = inlined_call_operand.vmem [shape: f32[1,128], index: 4, kind: input, shape index: {}]   ;;  %s2419_s5 = inlined_call_operand.hbm [shape: f32[2,8,128], index: 5, kind: output, shape index: {}]  }
   0x1   :  { %v23_v0 = vld [vmem:[%s2415_s1] sm:$0xff]  ;;  %v24_v1 = vld [vmem:[%s2415_s1 + $0x8] sm:$0xff]  ;;  %v25_v2 = vld [vmem:[%s2415_s1 + $0x10] sm:$0xff] }
   0x2   :  { %v2036_v3 = vpack.c.bf16 %v24_v1, %v23_v0  ;;  %v26_v4 = vld [vmem:[%s2415_s1 + $0x18] sm:$0xff]  ;;  %v27_v6 = vld [vmem:[%s2415_s1 + $0x20] sm:$0xff]  ;;  %v28_v7 = vld [vmem:[%s2415_s1 + $0x28] sm:$0xff] }
   0x3   :  { %v2040_v5 = vpack.c.bf16 %v26_v4, %v25_v2  ;;  %v2044_v8 = vpack.c.bf16 %v28_v7, %v27_v6  ;;  %v21_v9 = vld [vmem:[%s2414_s0] sm:$0xff]  ;;  %v29_v10 = vld [vmem:[%s2415_s1 + $0x30] sm:$0xff]  ;;  %v30_v11 = vld [vmem:[%s2415_s1 + $0x38] sm:$0xff] }
   0x4   :  { %2037 = vmatprep.subr.bf16.mxu0 %v2036_v3  ;;  %1933 = vmatprep.mubr.f32.mxu0 %v21_v9 }
   0x5   :  { %2039 = vmatpush3.bf16.msra.mxu0 %v2036_v3 }
   0x6   :  { %2041 = vmatprep.subr.bf16.mxu0 %v2040_v5 }
   0x7   :  { %10 = vsyncpa [#allocation3], 0  ;;  %v2048_v12 = vpack.c.bf16 %v30_v11, %v29_v10  ;;  %v31_v13 = vld [vmem:[%s2415_s1 + $0x40] sm:$0xff]  ;;  %v32_v14 = vld [vmem:[%s2415_s1 + $0x48] sm:$0xff]  ;;  %v2148_v26 = vmov 0.0   ;;  %vm2149_vm0 = vmmov 0  }
   0x8   :  { %v2052_v15 = vpack.c.bf16 %v32_v14, %v31_v13  ;;  %v33_v16 = vld [vmem:[%s2415_s1 + $0x50] sm:$0xff]  ;;  %v34_v17 = vld [vmem:[%s2415_s1 + $0x58] sm:$0xff]  ;;  %v35_v19 = vld [vmem:[%s2415_s1 + $0x60] sm:$0xff]  ;;  %1936 = vmatprep.subr.mxu1 %v2148_v26  ;;  %1938 = vmatprep.mubr.msk.f32.mxu1 %vm2149_vm0, %v2148_v26  ;;  %vm137_vm1 = vcmask 64512   ;;  %s2152_s30 = smov 88   ;;  %s2153_s6 = smov 120  }
   0x9   :  { %2043 = vmatpush3.bf16.msra.mxu0 %v2040_v5  ;;  %v2056_v18 = vpack.c.bf16 %v34_v17, %v33_v16  ;;  %v36_v20 = vld [vmem:[%s2415_s1 + $0x68] sm:$0xff]  ;;  %v37_v22 = vld [vmem:[%s2415_s1 + $0x70] sm:$0xff]  ;;  %v38_v23 = vld [vmem:[%s2415_s1 + $0x78] sm:$0xff]  ;;  %s2154_s9 = smov 56   ;;  %s2155_s10 = smov 80  }
   0xa   :  { %2045 = vmatprep.subr.bf16.mxu0 %v2044_v8  ;;  %v2060_v21 = vpack.c.bf16 %v36_v20, %v35_v19  ;;  %v2064_v24 = vpack.c.bf16 %v38_v23, %v37_v22  ;;  %v22_v25 = vld [vmem:[%s2414_s0 + $0x8] sm:$0xff]  ;;  %v1805_v27 = vld [vmem:[%s2416_s2] ss:$0 sm:$0xff]  ;;  %s2150_s0 = smov 96   ;;  %s2151_s2 = smov 64  }
   0xb   :  { %v121_v57 = vld [vmem:[%s2417_s3] sm:$0xff]  ;;  %s2156_s11 = smov 112   ;;  %s2157_s12 = smov 72  }
   0xc   :  { %s2158_s15 = smov 48   ;;  %s2159_s16 = smov 104  }
   0xd   :  { %2047 = vmatpush3.bf16.msra.mxu0 %v2044_v8  ;;  %s2160_s17 = smov 40   ;;  %s2161_s24 = smov [#allocation2]  }
   0xe   :  { %2049 = vmatprep.subr.bf16.mxu0 %v2048_v12  ;;  %s1794_s25 = sshll.u32 %s2161_s24, 4  ;;  %s1795_s25 = int_to_ptr.vmem [resolvable:$true] %s1794_s25 }
   0xf   :  { %p2129_p1 = scmp.lt.s32.totalorder %s1795_s25, %s1795_s25 }
  0x11   :  { %2051 = vmatpush3.bf16.msra.mxu0 %v2048_v12 }
  0x12   :  { %2053 = vmatprep.subr.bf16.mxu0 %v2052_v15 }
  0x15   :  { %2055 = vmatpush3.bf16.msra.mxu0 %v2052_v15 }
  0x16   :  { %2057 = vmatprep.subr.bf16.mxu0 %v2056_v18 }
  0x19   :  { %2059 = vmatpush3.bf16.msra.mxu0 %v2056_v18 }
  0x1a   :  { %2061 = vmatprep.subr.bf16.mxu0 %v2060_v21 }
  0x1d   :  { %2063 = vmatpush3.bf16.msra.mxu0 %v2060_v21 }
  0x1e   :  { %2065 = vmatprep.subr.bf16.mxu0 %v2064_v24 }
  0x21   :  { %2067 = vmatpush3.bf16.msra.mxu0 %v2064_v24  ;;  %v122_v24 = vld [vmem:[%s2417_s3 + $0x8] sm:$0xff] }
  0x22   :  { %1976 = vmatprep.subr.mxu0 %v2148_v26 }
  0x24   :  { %1934 = vmatmul.mubr.f32.vlgmr.msra.gmra.mrb[0].mxu0 %v22_v25 }
  0x25   :  { %1978 = vmatprep.mubr.msk.f32.mxu0 %vm2149_vm0, %v2148_v26 }
  0xf7   :  { %v1935_v28 = vpop.f32.mrb[0].mxu0 }
  0xf8   :  { %v112_v29 = vpop.f32.mrb[1].mxu0  ;;  %v2260_v31 = vadd.f32 %v1935_v28, %v1805_v27 }
  0xf9   :  { %v2257_v30 = vadd.f32 %v1805_v27, %v112_v29 }
  0xfa   :  { %v2274_v35 = vmul.f32 0.35355338, %v2260_v31 }
  0xfb   :  { %135 = vrot.lane.b32.xlu0 %v2257_v30, %s2150_s0  ;;  %v2266_v33 = vmul.f32 0.35355338, %v2257_v30 }
  0xff   :  { %214 = vrot.lane.b32.xlu0 %v2260_v31, %s2150_s0 }
 0x16d   :  { %v136_v32 = vpop.permute.xlu0 %135 }
 0x16e   :  { %1937 = vmatpush3.xpose.msk.msra.mxu1 %vm137_vm1, %v136_v32 }
 0x16f   :  { %1941 = vmatprep.subr.mxu1 %v2148_v26 }
 0x171   :  { %v215_v34 = vpop.permute.xlu0 %214  ;;  %1939 = vmatmul.mubr.msk.f32.vlgmr.msra.gmra.mrb[0].mxu1 %vm137_vm1, %v2266_v33 }
 0x172   :  { %1942 = vmatpush3.xpose.msk.msra.mxu1 %vm137_vm1, %v215_v34  ;;  %1943 = vmatprep.mubr.msk.f32.mxu1 %vm2149_vm0, %v2148_v26 }
 0x173   :  { %1946 = vmatprep.subr.mxu1 %v2148_v26 }
 0x175   :  { %1944 = vmatmul.mubr.msk.f32.vlgmr.msra.gmra.mrb[2].mxu1 %vm137_vm1, %v2274_v35 }
 0x176   :  { %1948 = vmatprep.mubr.msk.f32.mxu1 %vm2149_vm0, %v2148_v26 }
 0x244   :  { %v209_v36 = vpop.f32.mrb[0].mxu1 }
 0x245   :  { %v1940_v37 = vpop.f32.mrb[1].mxu1  ;;  %v291_v38 = vsel %vm137_vm1, %v209_v36, -inf }
 0x246   :  { %292 = vmax.xlane.f32.xlu1 %v291_v38 }
 0x248   :  { %v287_v39 = vpop.f32.mrb[2].mxu1 }
 0x249   :  { %v1945_v40 = vpop.f32.mrb[3].mxu1  ;;  %v294_v41 = vsel %vm137_vm1, %v287_v39, -inf }
 0x24a   :  { %295 = vmax.xlane.f32.xlu1 %v294_v41 }
 0x25b   :  { %313 = vrot.lane.b32.xlu1 %v2257_v30, %s2151_s2 }
 0x2d3   :  { %v293_v42 = vpop.xlane.xlu1 %292 }
 0x2d4   :  { %v297_v43 = vsub.f32 %v209_v36, %v293_v42 }
 0x2d6   :  { %v299_v44 = vmul.f32 1.442695, %v297_v43 }
 0x2d7   :  { %v296_v45 = vpop.xlane.xlu1 %295 }
 0x2d8   :  { %2092 = vpow2.f32 %v299_v44  ;;  %v298_v46 = vsub.f32 %v287_v39, %v296_v45 }
 0x2da   :  { %v301_v47 = vmul.f32 1.442695, %v298_v46 }
 0x2db   :  { %v314_v48 = vpop.permute.xlu1 %313 }
 0x2dc   :  { %2094 = vpow2.f32 %v301_v47  ;;  %1947 = vmatpush3.msra.mxu1 %v314_v48 }
 0x2dd   :  { %1951 = vmatprep.subr.mxu1 %v2148_v26 }
 0x2e2   :  { %v2093_v49 = vpop.eup %2092 }
 0x2e3   :  { %v303_v50 = vsel %vm137_vm1, %v2093_v49, 0.0 }
 0x2e4   :  { %304 = vadd.xlane.f32.xlu0 %v303_v50 }
 0x2e6   :  { %v2095_v51 = vpop.eup %2094 }
 0x2e7   :  { %v306_v52 = vsel %vm137_vm1, %v2095_v51, 0.0 }
 0x2e8   :  { %307 = vadd.xlane.f32.xlu1 %v306_v52 }
 0x2f9   :  { %389 = vrot.lane.b32.xlu1 %v2260_v31, %s2151_s2 }
 0x2fa   :  { %628 = vrot.lane.b32.xlu0 %v2260_v31, %s2152_s30 }
 0x2fd   :  { %550 = vrot.lane.b32.xlu1 %v2257_v30, %s2152_s30 }
 0x301   :  { %548 = vrot.lane.b32.xlu1 %v2266_v33, %s2153_s6 }
 0x305   :  { %626 = vrot.lane.b32.xlu1 %v2274_v35, %s2153_s6 }
 0x371   :  { %v305_v53 = vpop.xlane.xlu0 %304 }
 0x372   :  { %2096 = vrcp.f32 %v305_v53 }
 0x375   :  { %v308_v54 = vpop.xlane.xlu1 %307  ;;  %v629_v3 = vpop.permute.xlu0 %628 }
 0x376   :  { %2098 = vrcp.f32 %v308_v54 }
 0x379   :  { %v390_v58 = vpop.permute.xlu1 %389 }
 0x37c   :  { %v2097_v55 = vpop.eup %2096 }
 0x37d   :  { %v311_v56 = vmul.f32 %v2097_v55, %v2093_v49  ;;  %v551_v61 = vpop.permute.xlu1 %550 }
 0x37f   :  { %1949 = vmatmul.mubr.msk.f32.vlgmr.msra.gmra.mrb[4].mxu1 %vm137_vm1, %v311_v56 }
 0x380   :  { %v2099_v59 = vpop.eup %2098  ;;  %1952 = vmatpush3.msra.mxu1 %v390_v58  ;;  %1953 = vmatprep.mubr.msk.f32.mxu1 %vm2149_vm0, %v2148_v26 }
 0x381   :  { %v312_v60 = vmul.f32 %v2099_v59, %v2095_v51  ;;  %1956 = vmatprep.subr.mxu1 %v121_v57  ;;  %v549_v2 = vpop.permute.xlu1 %548 }
 0x383   :  { %1954 = vmatmul.mubr.msk.f32.vlgmr.msra.gmra.mrb[6].mxu1 %vm137_vm1, %v312_v60 }
 0x384   :  { %1957 = vmatpush3.msra.mxu1 %v121_v57 }
 0x385   :  { %1961 = vmatprep.subr.mxu1 %v2148_v26  ;;  %v627_v4 = vpop.permute.xlu1 %626 }
 0x452   :  { %v385_v62 = vpop.f32.mrb[4].mxu1 }
 0x453   :  { %v1950_v63 = vpop.f32.mrb[5].mxu1  ;;  %1958 = vmatprep.mubr.msk.f32.mxu1 %vm137_vm1, %v385_v62 }
 0x456   :  { %v461_v0 = vpop.f32.mrb[6].mxu1 }
 0x457   :  { %v1955_v1 = vpop.f32.mrb[7].mxu1  ;;  %1959 = vmatmul.mubr.msk.f32.vlgmr.msra.gmra.mrb[8].mxu1 %vm137_vm1, %v461_v0 }
 0x458   :  { %1962 = vmatpush3.xpose.msk.msra.mxu1 %vm137_vm1, %v551_v61  ;;  %1963 = vmatprep.mubr.msk.f32.mxu1 %vm2149_vm0, %v2148_v26 }
 0x459   :  { %1966 = vmatprep.subr.mxu1 %v2148_v26 }
 0x45b   :  { %1964 = vmatmul.mubr.msk.f32.vlgmr.msra.gmra.mrb[10].mxu1 %vm137_vm1, %v549_v2 }
 0x45c   :  { %1967 = vmatpush3.xpose.msk.msra.mxu1 %vm137_vm1, %v629_v3  ;;  %1968 = vmatprep.mubr.msk.f32.mxu1 %vm2149_vm0, %v2148_v26 }
 0x45d   :  { %1971 = vmatprep.subr.mxu1 %v2148_v26 }
 0x45f   :  { %1969 = vmatmul.mubr.msk.f32.vlgmr.msra.gmra.mrb[12].mxu1 %vm137_vm1, %v627_v4 }
 0x460   :  { %1973 = vmatprep.mubr.msk.f32.mxu1 %vm2149_vm0, %v2148_v26 }
 0x52e   :  { %v622_v5 = vpop.f32.mrb[10].mxu1 }
 0x52f   :  { %v1965_v6 = vpop.f32.mrb[11].mxu1  ;;  %v704_v7 = vsel %vm137_vm1, %v622_v5, -inf }
 0x530   :  { %705 = vmax.xlane.f32.xlu1 %v704_v7 }
 0x532   :  { %v700_v8 = vpop.f32.mrb[12].mxu1 }
 0x533   :  { %v1970_v9 = vpop.f32.mrb[13].mxu1  ;;  %v707_v10 = vsel %vm137_vm1, %v700_v8, -inf }
 0x534   :  { %708 = vmax.xlane.f32.xlu0 %v707_v10 }
 0x54a   :  { %802 = vrot.lane.b32.xlu0 %v2260_v31, %s2154_s9 }
 0x54e   :  { %1041 = vrot.lane.b32.xlu0 %v2260_v31, %s2155_s10 }
 0x5bd   :  { %v706_v11 = vpop.xlane.xlu1 %705 }
 0x5be   :  { %v710_v12 = vsub.f32 %v622_v5, %v706_v11 }
 0x5c0   :  { %v712_v13 = vmul.f32 1.442695, %v710_v12 }
 0x5c1   :  { %v709_v14 = vpop.xlane.xlu0 %708 }
 0x5c2   :  { %2100 = vpow2.f32 %v712_v13  ;;  %v711_v15 = vsub.f32 %v700_v8, %v709_v14  ;;  %v123_v13 = vld [vmem:[%s2417_s3 + $0x10] sm:$0xff] }
 0x5c4   :  { %v714_v16 = vmul.f32 1.442695, %v711_v15 }
 0x5c5   :  { %v803_v17 = vpop.permute.xlu0 %802 }
 0x5c6   :  { %2102 = vpow2.f32 %v714_v16  ;;  %1977 = vmatpush3.msra.mxu0 %v803_v17 }
 0x5c7   :  { %1986 = vmatprep.subr.mxu0 %v2148_v26 }
 0x5c9   :  { %v1042_v40 = vpop.permute.xlu0 %1041 }
 0x5cc   :  { %v2101_v18 = vpop.eup %2100 }
 0x5cd   :  { %v716_v19 = vsel %vm137_vm1, %v2101_v18, 0.0 }
 0x5ce   :  { %717 = vadd.xlane.f32.xlu1 %v716_v19 }
 0x5d0   :  { %v2103_v20 = vpop.eup %2102 }
 0x5d1   :  { %v719_v21 = vsel %vm137_vm1, %v2103_v20, 0.0 }
 0x5d2   :  { %720 = vadd.xlane.f32.xlu1 %v719_v21 }
 0x5e3   :  { %726 = vrot.lane.b32.xlu1 %v2257_v30, %s2154_s9 }
 0x5e7   :  { %963 = vrot.lane.b32.xlu1 %v2257_v30, %s2155_s10 }
 0x5eb   :  { %961 = vrot.lane.b32.xlu1 %v2266_v33, %s2156_s11 }
 0x5ef   :  { %1039 = vrot.lane.b32.xlu1 %v2274_v35, %s2156_s11 }
 0x5f3   :  { %1376 = vrot.lane.b32.xlu1 %v2257_v30, %s2157_s12 }
 0x65b   :  { %v718_v22 = vpop.xlane.xlu1 %717 }
 0x65c   :  { %2104 = vrcp.f32 %v718_v22 }
 0x65f   :  { %v721_v23 = vpop.xlane.xlu1 %720 }
 0x660   :  { %2106 = vrcp.f32 %v721_v23 }
 0x663   :  { %v727_v25 = vpop.permute.xlu1 %726 }
 0x664   :  { %1972 = vmatpush3.msra.mxu1 %v727_v25 }
 0x665   :  { %1981 = vmatprep.subr.mxu1 %v122_v24 }
 0x666   :  { %v2105_v27 = vpop.eup %2104 }
 0x667   :  { %v724_v28 = vmul.f32 %v2105_v27, %v2101_v18  ;;  %v964_v32 = vpop.permute.xlu1 %963 }
 0x669   :  { %1974 = vmatmul.mubr.msk.f32.vlgmr.msra.gmra.mrb[14].mxu1 %vm137_vm1, %v724_v28 }
 0x66a   :  { %v2107_v29 = vpop.eup %2106  ;;  %1982 = vmatpush3.msra.mxu1 %v122_v24 }
 0x66b   :  { %v725_v34 = vmul.f32 %v2107_v29, %v2103_v20  ;;  %1991 = vmatprep.subr.mxu1 %v2148_v26  ;;  %v962_v36 = vpop.permute.xlu1 %961 }
 0x66d   :  { %1979 = vmatmul.mubr.msk.f32.vlgmr.msra.gmra.mrb[2].mxu0 %vm137_vm1, %v725_v34 }
 0x66e   :  { %1987 = vmatpush3.xpose.msk.msra.mxu0 %vm137_vm1, %v964_v32  ;;  %1988 = vmatprep.mubr.msk.f32.mxu0 %vm2149_vm0, %v2148_v26 }
 0x66f   :  { %1996 = vmatprep.subr.mxu0 %v2148_v26  ;;  %v1040_v42 = vpop.permute.xlu1 %1039 }
 0x671   :  { %1989 = vmatmul.mubr.msk.f32.vlgmr.msra.gmra.mrb[4].mxu0 %vm137_vm1, %v962_v36 }
 0x672   :  { %1998 = vmatprep.mubr.msk.f32.mxu0 %vm2149_vm0, %v2148_v26 }
 0x73c   :  { %v798_v37 = vpop.f32.mrb[14].mxu1 }
 0x73d   :  { %v1975_v38 = vpop.f32.mrb[15].mxu1  ;;  %1983 = vmatprep.mubr.msk.f32.mxu1 %vm137_vm1, %v798_v37 }
 0x740   :  { %v874_v39 = vpop.f32.mrb[2].mxu0 }
 0x741   :  { %v1980_v41 = vpop.f32.mrb[3].mxu0  ;;  %1984 = vmatmul.mubr.msk.f32.vlgmr.msra.gmra.mrb[8].mxu1 %vm137_vm1, %v874_v39 }
 0x742   :  { %1992 = vmatpush3.xpose.msk.msra.mxu1 %vm137_vm1, %v1042_v40  ;;  %1993 = vmatprep.mubr.msk.f32.mxu1 %vm2149_vm0, %v2148_v26  ;;  %v1806_v41 = vld [vmem:[%s2418_s4] ss:$0 sm:$0xff] }
 0x743   :  { %2001 = vmatprep.subr.mxu1 %v2148_v26 }
 0x744   :  { %v1035_v43 = vpop.f32.mrb[4].mxu0 }
 0x745   :  { %v1990_v44 = vpop.f32.mrb[5].mxu0  ;;  %1994 = vmatmul.mubr.msk.f32.vlgmr.msra.gmra.mrb[16].mxu1 %vm137_vm1, %v1040_v42  ;;  %v1117_v45 = vsel %vm137_vm1, %v1035_v43, -inf }
 0x746   :  { %1118 = vmax.xlane.f32.xlu0 %v1117_v45  ;;  %2003 = vmatprep.mubr.msk.f32.mxu1 %vm2149_vm0, %v2148_v26 }
 0x75c   :  { %1139 = vrot.lane.b32.xlu0 %v2257_v30, %s2158_s15 }
 0x760   :  { %1374 = vrot.lane.b32.xlu0 %v2266_v33, %s2159_s16 }
 0x764   :  { %1452 = vrot.lane.b32.xlu0 %v2274_v35, %s2159_s16  ;;  %v1377_v35 = vpop.permute.xlu1 %1376 }
 0x7d3   :  { %v1119_v46 = vpop.xlane.xlu0 %1118 }
 0x7d4   :  { %v1123_v47 = vsub.f32 %v1035_v43, %v1119_v46 }
 0x7d6   :  { %v1125_v48 = vmul.f32 1.442695, %v1123_v47 }
 0x7d7   :  { %v1140_v49 = vpop.permute.xlu0 %1139 }
 0x7d8   :  { %2108 = vpow2.f32 %v1125_v48  ;;  %1997 = vmatpush3.msra.mxu0 %v1140_v49 }
 0x7d9   :  { %2011 = vmatprep.subr.mxu0 %v2148_v26 }
 0x7db   :  { %v1375_v57 = vpop.permute.xlu0 %1374 }
 0x7df   :  { %v1453_v59 = vpop.permute.xlu0 %1452 }
 0x7e2   :  { %v2109_v50 = vpop.eup %2108 }
 0x7e3   :  { %v1129_v51 = vsel %vm137_vm1, %v2109_v50, 0.0 }
 0x7e4   :  { %1130 = vadd.xlane.f32.xlu1 %v1129_v51 }
 0x7f5   :  { %1454 = vrot.lane.b32.xlu1 %v2260_v31, %s2157_s12 }
 0x818   :  { %v1113_v52 = vpop.f32.mrb[16].mxu1 }
 0x819   :  { %v1995_v53 = vpop.f32.mrb[17].mxu1  ;;  %v1120_v33 = vsel %vm137_vm1, %v1113_v52, -inf }
 0x81a   :  { %1121 = vmax.xlane.f32.xlu1 %v1120_v33 }
 0x871   :  { %v1131_v54 = vpop.xlane.xlu1 %1130 }
 0x872   :  { %2110 = vrcp.f32 %v1131_v54 }
 0x875   :  { %v1455_v58 = vpop.permute.xlu1 %1454 }
 0x87c   :  { %v2111_v55 = vpop.eup %2110 }
 0x87d   :  { %v1137_v56 = vmul.f32 %v2111_v55, %v2109_v50 }
 0x87f   :  { %1999 = vmatmul.mubr.msk.f32.vlgmr.msra.gmra.mrb[6].mxu0 %vm137_vm1, %v1137_v56 }
 0x880   :  { %2012 = vmatpush3.xpose.msk.msra.mxu0 %vm137_vm1, %v1377_v35  ;;  %2013 = vmatprep.mubr.msk.f32.mxu0 %vm2149_vm0, %v2148_v26 }
 0x881   :  { %2016 = vmatprep.subr.mxu0 %v2148_v26 }
 0x883   :  { %2014 = vmatmul.mubr.msk.f32.vlgmr.msra.gmra.mrb[8].mxu0 %vm137_vm1, %v1375_v57 }
 0x884   :  { %2017 = vmatpush3.xpose.msk.msra.mxu0 %vm137_vm1, %v1455_v58  ;;  %2018 = vmatprep.mubr.msk.f32.mxu0 %vm2149_vm0, %v2148_v26 }
 0x885   :  { %2026 = vmatprep.subr.mxu0 %v2148_v26 }
 0x887   :  { %2019 = vmatmul.mubr.msk.f32.vlgmr.msra.gmra.mrb[10].mxu0 %vm137_vm1, %v1453_v59 }
 0x888   :  { %2028 = vmatprep.mubr.msk.f32.mxu0 %vm2149_vm0, %v2148_v26 }
 0x8a7   :  { %v1122_v60 = vpop.xlane.xlu1 %1121 }
 0x8a8   :  { %v1124_v61 = vsub.f32 %v1113_v52, %v1122_v60 }
 0x8aa   :  { %v1127_v62 = vmul.f32 1.442695, %v1124_v61 }
 0x8ac   :  { %2112 = vpow2.f32 %v1127_v62 }
 0x8b6   :  { %v2113_v63 = vpop.eup %2112 }
 0x8b7   :  { %v1132_v0 = vsel %vm137_vm1, %v2113_v63, 0.0 }
 0x8b8   :  { %1133 = vadd.xlane.f32.xlu0 %v1132_v0 }
 0x8ce   :  { %1215 = vrot.lane.b32.xlu0 %v2260_v31, %s2158_s15 }
 0x8d2   :  { %1628 = vrot.lane.b32.xlu0 %v2260_v31, %s2160_s17 }
 0x945   :  { %v1134_v1 = vpop.xlane.xlu0 %1133 }
 0x946   :  { %2114 = vrcp.f32 %v1134_v1 }
 0x949   :  { %v1216_v2 = vpop.permute.xlu0 %1215 }
 0x94a   :  { %2002 = vmatpush3.msra.mxu1 %v1216_v2 }
 0x94b   :  { %2006 = vmatprep.subr.mxu1 %v123_v13 }
 0x94d   :  { %v1629_v3 = vpop.permute.xlu0 %1628 }
 0x94e   :  { %2027 = vmatpush3.msra.mxu0 %v1629_v3 }
 0x950   :  { %v2115_v4 = vpop.eup %2114 }
 0x951   :  { %v1138_v5 = vmul.f32 %v2115_v4, %v2113_v63 }
 0x952   :  { %v1211_v6 = vpop.f32.mrb[6].mxu0 }
 0x953   :  { %v2000_v7 = vpop.f32.mrb[7].mxu0  ;;  %2004 = vmatmul.mubr.msk.f32.vlgmr.msra.gmra.mrb[18].mxu1 %vm137_vm1, %v1138_v5 }
 0x954   :  { %2008 = vmatprep.mubr.msk.f32.mxu1 %vm137_vm1, %v1211_v6  ;;  %2007 = vmatpush3.msra.mxu1 %v123_v13 }
 0x955   :  { %2021 = vmatprep.subr.mxu1 %v2148_v26 }
 0x956   :  { %v1448_v8 = vpop.f32.mrb[8].mxu0 }
 0x957   :  { %v2015_v9 = vpop.f32.mrb[9].mxu0  ;;  %v1530_v10 = vsel %vm137_vm1, %v1448_v8, -inf }
 0x958   :  { %1531 = vmax.xlane.f32.xlu1 %v1530_v10 }
 0x95a   :  { %v1526_v31 = vpop.f32.mrb[10].mxu0 }
 0x95b   :  { %v2020_v11 = vpop.f32.mrb[11].mxu0  ;;  %v1533_v12 = vsel %vm137_vm1, %v1526_v31, -inf }
 0x95c   :  { %1534 = vmax.xlane.f32.xlu1 %v1533_v12 }
 0x9e5   :  { %v1532_v14 = vpop.xlane.xlu1 %1531 }
 0x9e6   :  { %v1536_v15 = vsub.f32 %v1448_v8, %v1532_v14 }
 0x9e8   :  { %v1538_v16 = vmul.f32 1.442695, %v1536_v15 }
 0x9e9   :  { %v1535_v17 = vpop.xlane.xlu1 %1534 }
 0x9ea   :  { %2116 = vpow2.f32 %v1538_v16  ;;  %v1537_v18 = vsub.f32 %v1526_v31, %v1535_v17 }
 0x9ec   :  { %v1540_v19 = vmul.f32 1.442695, %v1537_v18 }
 0x9ee   :  { %2118 = vpow2.f32 %v1540_v19 }
 0x9f4   :  { %v2117_v20 = vpop.eup %2116 }
 0x9f5   :  { %v1542_v21 = vsel %vm137_vm1, %v2117_v20, 0.0 }
 0x9f6   :  { %1543 = vadd.xlane.f32.xlu1 %v1542_v21 }
 0x9f8   :  { %v2119_v22 = vpop.eup %2118 }
 0x9f9   :  { %v1545_v23 = vsel %vm137_vm1, %v2119_v22, 0.0 }
 0x9fa   :  { %1546 = vadd.xlane.f32.xlu1 %v1545_v23 }
 0xa0b   :  { %1552 = vrot.lane.b32.xlu1 %v2257_v30, %s2160_s17  ;;  %v124_v30 = vld [vmem:[%s2417_s3 + $0x18] sm:$0xff]  ;;  %s2124_s3 = scalar_lea.vmem %s1795_s25, 256 }
 0xa0c   :  { %p2125_p0 = scmp.ne.s32.totalorder %s1795_s25, %s2124_s3  ;;  %p2130_p2 = scmp.lt.s32.totalorder %s2124_s3, %s2124_s3 }
 0xa0e   :  { %p2131_p3 = por %p2130_p2, %p2129_p1 }
 0xa10   :  { %p2132_p4 = pnand %p2131_p3, %p2125_p0 }
 0xa26   :  { %v1287_v24 = vpop.f32.mrb[18].mxu1 }
 0xa27   :  { %v2005_v25 = vpop.f32.mrb[19].mxu1  ;;  %2009 = vmatmul.mubr.msk.f32.vlgmr.msra.gmra.mrb[8].mxu1 %vm137_vm1, %v1287_v24 }
 0xa28   :  { %2023 = vmatprep.mubr.msk.f32.mxu1 %vm2149_vm0, %v2148_v26 }
 0xa83   :  { %v1544_v27 = vpop.xlane.xlu1 %1543 }
 0xa84   :  { %2120 = vrcp.f32 %v1544_v27 }
 0xa87   :  { %v1547_v28 = vpop.xlane.xlu1 %1546 }
 0xa88   :  { %2122 = vrcp.f32 %v1547_v28 }
 0xa8b   :  { %v1553_v29 = vpop.permute.xlu1 %1552 }
 0xa8c   :  { %2022 = vmatpush3.msra.mxu1 %v1553_v29 }
 0xa8d   :  { %2031 = vmatprep.subr.mxu1 %v124_v30 }
 0xa8e   :  { %v2121_v32 = vpop.eup %2120 }
 0xa8f   :  { %v1550_v34 = vmul.f32 %v2121_v32, %v2117_v20 }
 0xa91   :  { %2024 = vmatmul.mubr.msk.f32.vlgmr.msra.gmra.mrb[20].mxu1 %vm137_vm1, %v1550_v34 }
 0xa92   :  { %v2123_v36 = vpop.eup %2122  ;;  %2032 = vmatpush3.msra.mxu1 %v124_v30 }
 0xa93   :  { %v1551_v37 = vmul.f32 %v2123_v36, %v2119_v22 }
 0xa95   :  { %2029 = vmatmul.mubr.msk.f32.vlgmr.msra.gmra.mrb[12].mxu0 %vm137_vm1, %v1551_v37 }
 0xb64   :  { %v1624_v26 = vpop.f32.mrb[20].mxu1 }
 0xb65   :  { %v2025_v38 = vpop.f32.mrb[21].mxu1  ;;  %2033 = vmatprep.mubr.msk.f32.mxu1 %vm137_vm1, %v1624_v26 }
 0xb68   :  { %v1700_v39 = vpop.f32.mrb[12].mxu0 }
 0xb69   :  { %v2030_v40 = vpop.f32.mrb[13].mxu0  ;;  %2034 = vmatmul.mubr.msk.f32.vlgmr.msra.gmra.mrb[8].mxu1 %vm137_vm1, %v1700_v39 }
 0xc3c   :  { %v2035_v42 = vpop.f32.mrb[8].mxu1 }
 0xc3d   :  { %v2068_v43 = vadd.f32 %v2035_v42, %v1806_v41  ;;  %v1776_v44 = vpop.f32.mrb[9].mxu1 }
 0xc3e   :  { %v2069_v45 = vadd.f32 %v1806_v41, %v1776_v44 }
 0xc3f   :  { %1788 = vst [vmem:[#allocation2 + $0x8] sm:$0xff] %v2068_v43 }
 0xc40   :  { %1787 = vst [vmem:[#allocation2] sm:$0xff] %v2069_v45 }
 0xc41   :  { %2135 = shalt.err (!%p2132_p4)
}
 0xc42   :  { %s2136_s4 = scalar_lea.hbm %s2419_s5, 256 }
 0xc43   :  { %p2137_p5 = scmp.ne.s32.totalorder %s2419_s5, %s2136_s4  ;;  %p2140_p6 = scmp.lt.u32.totalorder %s2136_s4, %s2419_s5 }
 0xc45   :  { %p2142_p7 = pnand %p2140_p6, %p2137_p5 }
 0xc47   :  { %2145 = shalt.err (!%p2142_p7)
}
 0xc48   :  { %s2162_s2 = smov 128   ;;  %s2163_s30 = smov 8  }
 0xc49   :  { %1800 = dma.vmem_to_hbm [thread:$0]  %s1795_s25, 256, %s2419_s5, [#allocation3], %s2162_s2, %s2162_s2, %s2163_s30  }
 0xc4a   :  { %2146 = dma.done.wait [#allocation3], 256  }
 0xc4b   :  { %2147 = vsyncadd [#allocation3], 4294967040 }
 0xc4c   :  { %1804 = vsyncpa [#allocation3], 1 }

</bundles_post_ra>
